<compile_context>
chip_gen: v7x
topology: tpu7x:2x2x1
jax: 0.10.0
libtpu: 0.0.40
codegen_flags: <defaults>
</compile_context>

<pallas_src>
import functools

import jax
import jax.numpy as jnp
from jax.experimental import pallas as pl
from jax.experimental.pallas import tpu as pltpu

NUM_BRANCH = 9
FEAT_DIM = 128


def _cdiv(a, b):
    return -(-a // b)


def _round_up(a, b):
    return _cdiv(a, b) * b


def _compactness_kernel(x_ref, c_ref, out_ref, acc_ref, *, batch, tb):
    s = pl.program_id(1)
    n_s = pl.num_programs(1)

    @pl.when(s == 0)
    def _init():
        acc_ref[...] = jnp.zeros_like(acc_ref)

    x = x_ref[...]                       # (TB, ND) lane-dense tile
    c = c_ref[...]                       # (1, ND), broadcast over rows
    if x.dtype != jnp.float32:           # free VALU filler if bf16 inputs
        x = x.astype(jnp.float32)
    if c.dtype != jnp.float32:
        c = c.astype(jnp.float32)

    diff = x - c
    d = jnp.sum(diff * diff, axis=1, keepdims=True)   # (TB, 1) lane reduce
    d = jnp.clip(d, 1e-12, 1e12)                      # per-sample clamp

    # Mask batch-padding rows (true batch size baked in at trace time).
    base = (pl.program_id(0) * n_s + s) * tb
    row = jax.lax.broadcasted_iota(jnp.int32, d.shape, 0) + base
    d = jnp.where(row < batch, d, 0.0)

    acc_ref[...] += jnp.sum(d, axis=0, keepdims=True)  # (1, 1) running sum

    @pl.when(s == n_s - 1)
    def _finalize():
        # Write the per-chunk partial once, as a full (1, 8, 128) tile.
        out_ref[...] = jnp.broadcast_to(acc_ref[...][None], out_ref.shape)


def compactness_loss(x, centers, *, tb=512, num_chunks=2):
    """x: (B, num_branch, feat_dim); centers: (num_branch, feat_dim)."""
    B, N, D = x.shape
    assert centers.shape == (N, D)
    ND = N * D

    # Lane-dense layout: (B, N*D) and (1, N*D).
    x2 = x.reshape(B, ND)
    c2 = centers.reshape(1, ND)

    # Keep the lane axis a multiple of 128 (zero-padded lanes contribute 0).
    if ND % 128 != 0:
        pad = 128 - ND % 128
        x2 = jnp.pad(x2, ((0, 0), (0, pad)))
        c2 = jnp.pad(c2, ((0, 0), (0, pad)))
        ND += pad

    # Chunk/tile sizing (adaptive so tiny batches don't over-pad).
    nc = max(1, min(num_chunks, _cdiv(B, 8)))
    rows_per_chunk = _cdiv(B, nc)
    tb_eff = min(tb, _round_up(rows_per_chunk, 8))
    steps = _cdiv(rows_per_chunk, tb_eff)
    b_pad = nc * steps * tb_eff
    if b_pad != B:
        x2 = jnp.pad(x2, ((0, b_pad - B), (0, 0)))

    kernel = functools.partial(_compactness_kernel, batch=B, tb=tb_eff)

    partials = pl.pallas_call(
        kernel,
        out_shape=jax.ShapeDtypeStruct((nc, 8, 128), jnp.float32),
        grid=(nc, steps),
        in_specs=[
            pl.BlockSpec((tb_eff, ND), lambda c, s: (c * steps + s, 0)),
            pl.BlockSpec((1, ND), lambda c, s: (0, 0)),     # centers, resident
        ],
        out_specs=pl.BlockSpec((1, 8, 128), lambda c, s: (c, 0, 0)),
        scratch_shapes=[pltpu.VMEM((1, 1), jnp.float32)],
        compiler_params=pltpu.CompilerParams(
            dimension_semantics=("parallel", "arbitrary")),
    )(x2, c2)

    # Finish: sum per-chunk partials and take the mean over the true batch.
    return jnp.sum(partials[:, 0, 0]) / B


if __name__ == "__main__":
    key = jax.random.PRNGKey(0)
    kx, kc, kx2 = jax.random.split(key, 3)

    def ref_loss(x, centers):
        dist = jnp.sum((x - centers[None]) ** 2, axis=(-1, -2))
        return jnp.mean(jnp.clip(dist, 1e-12, 1e12))

    # Small shapes consistent with the module defaults.
    B = 2
    x = jax.random.normal(kx, (B, NUM_BRANCH, FEAT_DIM), dtype=jnp.float32)
    # Deterministic stand-in for nn.Parameter(torch.randn(num_branch, feat_dim))
    centers = jax.random.normal(kc, (NUM_BRANCH, FEAT_DIM), dtype=jnp.float32)

    loss = jax.block_until_ready(compactness_loss(x, centers))
    assert jnp.allclose(loss, ref_loss(x, centers), rtol=1e-5, atol=1e-5), loss

    # Ragged batch exercising the multi-chunk / multi-step masked path.
    B2 = 37
    x_big = jax.random.normal(kx2, (B2, NUM_BRANCH, FEAT_DIM), dtype=jnp.float32)
    loss2 = jax.block_until_ready(
        compactness_loss(x_big, centers, tb=16, num_chunks=2))
    assert jnp.allclose(loss2, ref_loss(x_big, centers), rtol=1e-5, atol=1e-5), loss2

    print("KERNEL_OK")
</pallas_src>

<mosaic_0001>
module attributes {stable_mosaic.version = 11 : i64} {
  func.func @_compactness_kernel(%arg0: i32, %arg1: i32, %arg2: memref<8x1152xf32, #tpu.memory_space<vmem>>, %arg3: memref<1x1152xf32, #tpu.memory_space<vmem>>, %arg4: memref<1x8x128xf32, #tpu.memory_space<vmem>>, %arg5: memref<1x1xf32, #tpu.memory_space<vmem>>) attributes {dimension_semantics = [#tpu.dimension_semantics<parallel>, #tpu.dimension_semantics<arbitrary>], iteration_bounds = array<i64: 1, 1>, scalar_prefetch = 0 : i64, scratch_operands = 1 : i64, tpu.core_type = #tpu.core_type<tc>, window_params = [{transform_indices = @transform_0, window_bounds = array<i64: 8, 1152>}, {pipeline_mode = #tpu.pipeline_mode<synchronous>, transform_indices = @transform_1, window_bounds = array<i64: 1, 1152>}, {transform_indices = @transform_2, window_bounds = array<i64: 1, 8, 128>}]} {
    %c0_i32 = arith.constant 0 : i32
    %0 = arith.cmpi eq, %arg1, %c0_i32 : i32
    %1 = arith.extui %0 : i1 to i32
    %c0_i32_0 = arith.constant 0 : i32
    %2 = arith.cmpi ne, %1, %c0_i32_0 : i32
    scf.if %2 {
      %cst_14 = arith.constant 0.000000e+00 : f32
      %32 = vector.broadcast %cst_14 : f32 to vector<1x1xf32>
      %c0_15 = arith.constant 0 : index
      %c0_16 = arith.constant 0 : index
      %33 = vector.load %arg5[%c0_15, %c0_16] : memref<1x1xf32, #tpu.memory_space<vmem>>, vector<1x1xf32>
      tpu.vector_store %arg5[%c0_15, %c0_16], %32 {strides = array<i32>} : memref<1x1xf32, #tpu.memory_space<vmem>>, vector<1x1xf32>,
    } else {
    }
    %c0 = arith.constant 0 : index
    %c0_1 = arith.constant 0 : index
    %3 = vector.load %arg2[%c0, %c0_1] : memref<8x1152xf32, #tpu.memory_space<vmem>>, vector<8x1152xf32>
    %c0_2 = arith.constant 0 : index
    %c0_3 = arith.constant 0 : index
    %4 = vector.load %arg3[%c0_2, %c0_3] : memref<1x1152xf32, #tpu.memory_space<vmem>>, vector<1x1152xf32>
    %5 = vector.broadcast %4 : vector<1x1152xf32> to vector<8x1152xf32>
    %6 = arith.subf %3, %5 : vector<8x1152xf32>
    %7 = arith.mulf %6, %6 : vector<8x1152xf32>
    %cst = arith.constant dense<0.000000e+00> : vector<8xf32>
    %8 = vector.multi_reduction <add>, %7, %cst [1] : vector<8x1152xf32> to vector<8xf32>
    %9 = vector.shape_cast %8 : vector<8xf32> to vector<8x1xf32>
    %cst_4 = arith.constant 9.99999996E-13 : f32
    %cst_5 = arith.constant 9.99999995E+11 : f32
    %10 = vector.broadcast %cst_4 : f32 to vector<8x1xf32>
    %11 = arith.maximumf %10, %9 : vector<8x1xf32>
    %12 = vector.broadcast %cst_5 : f32 to vector<8x1xf32>
    %13 = arith.minimumf %12, %11 : vector<8x1xf32>
    %c1_i32 = arith.constant 1 : i32
    %14 = arith.muli %arg0, %c1_i32 : i32
    %15 = arith.addi %14, %arg1 : i32
    %c8_i32 = arith.constant 8 : i32
    %16 = arith.muli %15, %c8_i32 : i32
    %17 = tpu.iota {dimensions = array<i32: 0>} : vector<8x1xi32>
    %18 = vector.broadcast %16 : i32 to vector<8x1xi32>
    %19 = arith.addi %17, %18 : vector<8x1xi32>
    %c2_i32 = arith.constant 2 : i32
    %20 = vector.broadcast %c2_i32 : i32 to vector<8x1xi32>
    %21 = arith.cmpi slt, %19, %20 : vector<8x1xi32>
    %cst_6 = arith.constant 0.000000e+00 : f32
    %22 = vector.broadcast %cst_6 : f32 to vector<8x1xf32>
    %23 = arith.select %21, %13, %22 : vector<8x1xi1>, vector<8x1xf32>
    %c0_7 = arith.constant 0 : index
    %c0_8 = arith.constant 0 : index
    %24 = vector.load %arg5[%c0_7, %c0_8] : memref<1x1xf32, #tpu.memory_space<vmem>>, vector<1x1xf32>
    %cst_9 = arith.constant dense<0.000000e+00> : vector<1xf32>
    %25 = vector.multi_reduction <add>, %23, %cst_9 [0] : vector<8x1xf32> to vector<1xf32>
    %26 = vector.shape_cast %25 : vector<1xf32> to vector<1x1xf32>
    %27 = arith.addf %24, %26 : vector<1x1xf32>
    %c0_10 = arith.constant 0 : index
    %c0_11 = arith.constant 0 : index
    %28 = vector.load %arg5[%c0_10, %c0_11] : memref<1x1xf32, #tpu.memory_space<vmem>>, vector<1x1xf32>
    tpu.vector_store %arg5[%c0_10, %c0_11], %27 {strides = array<i32>} : memref<1x1xf32, #tpu.memory_space<vmem>>, vector<1x1xf32>,
    %c0_i32_12 = arith.constant 0 : i32
    %29 = arith.cmpi eq, %arg1, %c0_i32_12 : i32
    %30 = arith.extui %29 : i1 to i32
    %c0_i32_13 = arith.constant 0 : i32
    %31 = arith.cmpi ne, %30, %c0_i32_13 : i32
    scf.if %31 {
      %c0_14 = arith.constant 0 : index
      %c0_15 = arith.constant 0 : index
      %32 = vector.load %arg5[%c0_14, %c0_15] : memref<1x1xf32, #tpu.memory_space<vmem>>, vector<1x1xf32>
      %33 = vector.shape_cast %32 : vector<1x1xf32> to vector<1x1x1xf32>
      %34 = vector.shape_cast %33 : vector<1x1x1xf32> to vector<1x1x1xf32>
      %35 = vector.broadcast %34 : vector<1x1x1xf32> to vector<1x8x128xf32>
      %c0_16 = arith.constant 0 : index
      %c0_17 = arith.constant 0 : index
      %c0_18 = arith.constant 0 : index
      %36 = vector.load %arg4[%c0_16, %c0_17, %c0_18] : memref<1x8x128xf32, #tpu.memory_space<vmem>>, vector<1x8x128xf32>
      tpu.vector_store %arg4[%c0_16, %c0_17, %c0_18], %35 {strides = array<i32>} : memref<1x8x128xf32, #tpu.memory_space<vmem>>, vector<1x8x128xf32>,
    } else {
    }
    return
  }
  func.func @transform_0(%arg0: i32, %arg1: i32) -> (i32, i32) {
    %c1_i32 = arith.constant 1 : i32
    %0 = arith.muli %arg0, %c1_i32 : i32
    %1 = arith.addi %0, %arg1 : i32
    %c0_i32 = arith.constant 0 : i32
    %c0_i32_0 = arith.constant 0 : i32
    return %1, %c0_i32 : i32, i32
  }
  func.func @transform_1(%arg0: i32, %arg1: i32) -> (i32, i32) {
    %c0_i32 = arith.constant 0 : i32
    %c0_i32_0 = arith.constant 0 : i32
    %c0_i32_1 = arith.constant 0 : i32
    return %c0_i32, %c0_i32_0 : i32, i32
  }
  func.func @transform_2(%arg0: i32, %arg1: i32) -> (i32, i32, i32) {
    %c0_i32 = arith.constant 0 : i32
    %c0_i32_0 = arith.constant 0 : i32
    %c0_i32_1 = arith.constant 0 : i32
    return %arg0, %c0_i32, %c0_i32_0 : i32, i32, i32
  }
}

</mosaic_0001>

<bundles_post_ra>
// kernel: tpu_custom_call.1
= control target key start
LH: loop header
LB: loop body
LE: loop exit
PB: predicated region body
PF: predicated region fallthrough
CT: control target
= control target key end

     0   :  { %7 = vsyncpa [#allocation4], 0  ;;  %s321_s0 = inlined_call_operand.hbm [shape: f32[8,1152], index: 0, kind: input, shape index: {}]   ;;  %s322_s1 = inlined_call_operand.hbm [shape: f32[1,1152], index: 1, kind: input, shape index: {}]   ;;  %s323_s2 = inlined_call_operand.hbm [shape: f32[1,8,128], index: 2, kind: output, shape index: {}]  }
   0x1   :  { %8 = vsyncpa [#allocation7], 0 }
   0x2   :  { %9 = vsyncpa [#allocation5], 0  ;;  %s263_s9 = smov [#allocation3]   ;;  %s264_s11 = smov [#allocation6]  }
   0x3   :  { %s20_s10 = sshll.u32 %s263_s9, 4  ;;  %s30_s12 = sshll.u32 %s264_s11, 4  ;;  %s21_s10 = int_to_ptr.vmem [resolvable:$true] %s20_s10  ;;  %s31_s12 = int_to_ptr.vmem [resolvable:$true] %s30_s12 }
   0x4   :  { %s191_s15 = scalar_lea.hbm %s321_s0, 1152 }
   0x5   :  { %p192_p0 = scmp.ne.s32.totalorder %s321_s0, %s191_s15  ;;  %p195_p1 = scmp.lt.u32.totalorder %s191_s15, %s321_s0 }
   0x7   :  { %p197_p2 = pnand %p195_p1, %p192_p0 }
   0x9   :  { %200 = shalt.err (!%p197_p2)
}
   0xa   :  { %s201_s20 = scalar_lea.vmem %s21_s10, 1152  ;;  %p206_p4 = scmp.lt.s32.totalorder %s21_s10, %s21_s10 }
   0xb   :  { %p202_p3 = scmp.ne.s32.totalorder %s21_s10, %s201_s20  ;;  %p207_p5 = scmp.lt.s32.totalorder %s201_s20, %s201_s20 }
   0xd   :  { %p208_p6 = por %p207_p5, %p206_p4 }
   0xf   :  { %p209_p7 = pnand %p208_p6, %p202_p3 }
  0x11   :  { %212 = shalt.err (!%p209_p7)
}
  0x12   :  { %23 = dma.hbm_to_vmem [thread:$0]  %s321_s0, 1152, %s21_s10, [#allocation4]  }
  0x13   :  { %s213_s25 = scalar_lea.hbm %s322_s1, 144 }
  0x14   :  { %p214_p8 = scmp.ne.s32.totalorder %s322_s1, %s213_s25  ;;  %p217_p9 = scmp.lt.u32.totalorder %s213_s25, %s322_s1 }
  0x16   :  { %p219_p10 = pnand %p217_p9, %p214_p8 }
  0x18   :  { %222 = shalt.err (!%p219_p10)
}
  0x19   :  { %s223_s30 = scalar_lea.vmem %s31_s12, 144  ;;  %s227_s3 = scalar_lea.vmem %s31_s12, 160 }
  0x1a   :  { %p224_p11 = scmp.ne.s32.totalorder %s31_s12, %s223_s30  ;;  %p228_p12 = scmp.lt.s32.totalorder %s31_s12, %s31_s12 }
  0x1b   :  { %p229_p13 = scmp.lt.s32.totalorder %s227_s3, %s223_s30 }
  0x1d   :  { %p230_p0 = por %p229_p13, %p228_p12 }
  0x1f   :  { %p231_p1 = pnand %p230_p0, %p224_p11 }
  0x21   :  { %234 = shalt.err (!%p231_p1)
}
  0x22   :  { %33 = dma.hbm_to_vmem [thread:$0]  %s322_s1, 144, %s31_s12, [#allocation7]  }
  0x23   :  { %257 = dma.done.wait [#allocation4], 1152  }
  0x24   :  { %258 = vsyncadd [#allocation4], 4294966144 }
  0x25   :  { %259 = dma.done.wait [#allocation7], 144  }
  0x26   :  { %260 = vsyncadd [#allocation7], 4294967152  ;;  %v60_v0 = vlaneseq  ;;  %vm45_vm0 = vcmask 0   ;;  %v265_v1 = vmov 0.0   ;;  %v47_v9 = vld [vmem:[#allocation3] sm:$0xff]  ;;  %v48_v10 = vld [vmem:[#allocation3 + $0x8] sm:$0xff] }
  0x27   :  { %46 = vst.msk [vmem:[#allocation2] sm:$0x1] %vm45_vm0, %v265_v1  ;;  %v49_v11 = vld [vmem:[#allocation3 + $0x10] sm:$0xff]  ;;  %v50_v12 = vld [vmem:[#allocation3 + $0x18] sm:$0xff]  ;;  %v56_v13 = vld [vmem:[#allocation6] sm:$0xff]  ;;  %v266_v56 = vmov 0  }
  0x28   :  { %v61_v2 = vshrl.u32 %v60_v0, 7  ;;  %v51_v19 = vld [vmem:[#allocation3 + $0x20] sm:$0xff]  ;;  %v52_v27 = vld [vmem:[#allocation3 + $0x28] sm:$0xff]  ;;  %v53_v33 = vld [vmem:[#allocation3 + $0x30] sm:$0xff]  ;;  %190 = vset.pattern.permute.xlu0 %v266_v56  ;;  %s267_s1 = smov [#allocation8]  }
  0x29   :  { %v54_v38 = vld [vmem:[#allocation3 + $0x38] sm:$0xff]  ;;  %v55_v42 = vld [vmem:[#allocation3 + $0x40] sm:$0xff]  ;;  %v183_v43 = vld [vmem:[#allocation6 + $0x8] ss:$0 sm:$0xff]  ;;  %s173_s5 = sshll.u32 %s267_s1, 4  ;;  %s174_s5 = int_to_ptr.vmem [resolvable:$true] %s173_s5 }
  0x2a   :  { %v62_v3 = vsub.s32 0, %v61_v2  ;;  %v66_v4 = vsub.s32 1, %v61_v2  ;;  %v70_v5 = vsub.s32 2, %v61_v2  ;;  %v74_v6 = vsub.s32 3, %v61_v2  ;;  %s235_s6 = scalar_lea.vmem %s174_s5, 128  ;;  %p240_p3 = scmp.lt.s32.totalorder %s174_s5, %s174_s5 }
  0x2b   :  { %v78_v7 = vsub.s32 4, %v61_v2  ;;  %v82_v8 = vsub.s32 5, %v61_v2  ;;  %v86_v14 = vsub.s32 6, %v61_v2  ;;  %v90_v22 = vsub.s32 7, %v61_v2  ;;  %p236_p2 = scmp.ne.s32.totalorder %s174_s5, %s235_s6  ;;  %p241_p4 = scmp.lt.s32.totalorder %s235_s6, %s235_s6 }
  0x2c   :  { %v63_v15 = vrot.slane %v56_v13, %v62_v3  ;;  %v67_v16 = vrot.slane %v56_v13, %v66_v4  ;;  %v71_v17 = vrot.slane %v56_v13, %v70_v5  ;;  %v75_v18 = vrot.slane %v56_v13, %v74_v6 }
  0x2d   :  { %v79_v20 = vrot.slane %v56_v13, %v78_v7  ;;  %v83_v21 = vrot.slane %v56_v13, %v82_v8  ;;  %v87_v28 = vrot.slane %v56_v13, %v86_v14  ;;  %v91_v34 = vrot.slane %v56_v13, %v90_v22  ;;  %p242_p5 = por %p241_p4, %p240_p3 }
  0x2e   :  { %v105_v23 = vsub.f32 %v47_v9, %v63_v15  ;;  %v106_v24 = vsub.f32 %v48_v10, %v67_v16  ;;  %v107_v25 = vsub.f32 %v49_v11, %v71_v17  ;;  %v108_v26 = vsub.f32 %v50_v12, %v75_v18  ;;  %v143_v3 = vld [vmem:[#allocation2] sm:$0x1] }
  0x2f   :  { %v109_v29 = vsub.f32 %v51_v19, %v79_v20  ;;  %v110_v35 = vsub.f32 %v52_v27, %v83_v21  ;;  %v111_v39 = vsub.f32 %v53_v33, %v87_v28  ;;  %v112_v44 = vsub.f32 %v54_v38, %v91_v34  ;;  %p243_p6 = pnand %p242_p5, %p236_p2 }
  0x30   :  { %v114_v30 = vmul.f32 %v105_v23, %v105_v23  ;;  %v115_v31 = vmul.f32 %v106_v24, %v106_v24  ;;  %v116_v32 = vmul.f32 %v107_v25, %v107_v25  ;;  %v117_v36 = vmul.f32 %v108_v26, %v108_v26 }
  0x31   :  { %v118_v40 = vmul.f32 %v109_v29, %v109_v29  ;;  %v119_v45 = vmul.f32 %v110_v35, %v110_v35  ;;  %v113_v47 = vsub.f32 %v55_v42, %v183_v43  ;;  %v120_v48 = vmul.f32 %v111_v39, %v111_v39 }
  0x32   :  { %v123_v37 = vadd.f32 %v115_v31, %v114_v30  ;;  %v121_v50 = vmul.f32 %v112_v44, %v112_v44  ;;  %vm141_vm1 = vcmp.lt.s32.totalorder %v61_v2, 2 }
  0x33   :  { %v122_v52 = vmul.f32 %v113_v47, %v113_v47 }
  0x34   :  { %v124_v41 = vadd.f32 %v123_v37, %v116_v32 }
  0x36   :  { %v125_v46 = vadd.f32 %v124_v41, %v117_v36 }
  0x38   :  { %v126_v49 = vadd.f32 %v125_v46, %v118_v40 }
  0x3a   :  { %v127_v51 = vadd.f32 %v126_v49, %v119_v45 }
  0x3c   :  { %v128_v53 = vadd.f32 %v127_v51, %v120_v48 }
  0x3e   :  { %v129_v54 = vadd.f32 %v128_v53, %v121_v50 }
  0x40   :  { %v130_v55 = vadd.f32 %v129_v54, %v122_v52 }
  0x42   :  { %131 = vadd.xlane.f32.xlu0 %v130_v55 }
  0xcf   :  { %v132_v57 = vpop.xlane.xlu0 %131 }
  0xd0   :  { %v133_v58 = vmax.f32 %v132_v57, 1e-12 }
  0xd2   :  { %v134_v59 = vmin.f32 %v133_v58, 1e+12 }
  0xd4   :  { %v142_v60 = vsel %vm141_vm1, %v134_v59, 0.0 }
  0xd5   :  { %v144_v61 = vrot.slane %v142_v60, 4 }
  0xd7   :  { %v145_v62 = vadd.f32 %v144_v61, %v142_v60 }
  0xd9   :  { %v146_v63 = vrot.slane %v145_v62, 2 }
  0xdb   :  { %v147_v0 = vadd.f32 %v146_v63, %v145_v62 }
  0xdd   :  { %v148_v1 = vrot.slane %v147_v0, 1 }
  0xdf   :  { %v149_v4 = vadd.f32 %v148_v1, %v147_v0 }
  0xe1   :  { %v150_v5 = vadd.f32 %v149_v4, %v143_v3 }
  0xe3   :  { %152 = vst.msk [vmem:[#allocation2] sm:$0x1] %vm45_vm0, %v150_v5 }
  0xea   :  { %v184_v6 = vld [vmem:[#allocation2] ss:$0 sm:$0xff] }
  0xeb   :  { %163 = vperm.xlu0 %190, %v184_v6  }
 0x16a   :  { %v164_v7 = vpop.permute.xlu0 %163 }
 0x16b   :  { %166 = vst [vmem:[#allocation8] sm:$0xff] %v164_v7 }
 0x16c   :  { %246 = shalt.err (!%p243_p6)
}
 0x16d   :  { %s247_s9 = scalar_lea.hbm %s323_s2, 128 }
 0x16e   :  { %p248_p7 = scmp.ne.s32.totalorder %s323_s2, %s247_s9  ;;  %p251_p8 = scmp.lt.u32.totalorder %s247_s9, %s323_s2 }
 0x170   :  { %p253_p9 = pnand %p251_p8, %p248_p7 }
 0x172   :  { %256 = shalt.err (!%p253_p9)
}
 0x173   :  { %176 = dma.vmem_to_hbm [thread:$0]  %s174_s5, 128, %s323_s2, [#allocation5]  }
 0x174   :  { %261 = dma.done.wait [#allocation5], 128  }
 0x175   :  { %262 = vsyncadd [#allocation5], 4294967168 }
 0x176   :  { %180 = vsyncpa [#allocation4], 1 }
 0x177   :  { %181 = vsyncpa [#allocation7], 1 }
 0x178   :  { %182 = vsyncpa [#allocation5], 1 }

</bundles_post_ra>
